<compile_context>
chip_gen: v6e
topology: v6e:2x2x1
jax: 0.10.0
libtpu: 0.0.40
codegen_flags: <defaults>
</compile_context>

<pallas_src>
import jax
import jax.numpy as jnp
from jax.experimental import pallas as pl
from jax.experimental.pallas import tpu as pltpu


def _round_up(x, m):
    return (x + m - 1) // m * m


def _hidden_alignment(H):
    """MXU-width alignment for the hidden dim: 128 on v5e (4x128x128 MXU),
    256 on v6e/v7x (2x256x256 MXU).  Tiny H stays at 128 regardless."""
    if H <= 128:
        return 128
    try:
        kind = jax.devices()[0].device_kind.lower()
    except Exception:
        kind = ""
    if any(tag in kind for tag in ("v2", "v3", "v4", "v5")):
        return 128
    return 256


def _vmem_capacity_bytes():
    try:
        return int(pltpu.get_tpu_info().vmem_capacity_bytes)
    except Exception:
        return 64 << 20   # conservative fallback (v7x per-TensorCore VMEM)


def _choose_tile_b(B, requested):
    """Batch tile: bigger tiles amortize the ~0.35us/step pipeline overhead;
    capped so there are >= 2 grid steps when the batch allows (v7x megacore)."""
    Bp8 = _round_up(B, 8)
    if requested is None:
        requested = 512 if B >= 1024 else (256 if B >= 512 else 128)
    tb = min(requested, Bp8)
    half = _round_up((Bp8 + 1) // 2, 8)
    if Bp8 >= 16 and tb > half:
        tb = half
    return max(tb, 8)


def _discriminator_kernel(x_ref,
                          w1_ref, b1_ref,
                          w2_ref, b2_ref,
                          w3_ref, b3_ref,
                          w4_ref, b4_ref,
                          w5_ref, b5_ref,
                          out_ref):
    # Layer 1: x arrives pre-cast to bf16 (halved DMA, no per-tile VPU pack).
    h = jnp.dot(x_ref[...], w1_ref[...], preferred_element_type=jnp.float32)
    h = jnp.maximum(h + b1_ref[...], 0.0)

    def dense_relu(h, w_ref, b_ref):
        # bf16 operands on the MXU, f32 accumulation; bias add / ReLU in f32
        # on the VPU (v5e has no bf16 VPU -- keep elementwise math f32).
        y = jnp.dot(h.astype(jnp.bfloat16), w_ref[...],
                    preferred_element_type=jnp.float32)
        return jnp.maximum(y + b_ref[...], 0.0)

    h = dense_relu(h, w2_ref, b2_ref)
    h = dense_relu(h, w3_ref, b3_ref)
    h = dense_relu(h, w4_ref, b4_ref)

    # Final Linear(H, 1): VPU multiply + lane reduction against the resident
    # (1, Hp) fc5 row. An N=1 MXU matmul would use 1/256 of the array columns.
    logits = jnp.sum(h * w5_ref[...], axis=-1, keepdims=True) + b5_ref[0, 0]
    sig = jax.nn.sigmoid(logits)                      # exp on the EUP, f32
    # Lane-dense bf16 store (wrapper slices column 0): avoids masked vst.msk
    # partial stores and halves the broadcast write amplification.
    # TODO(synk): an XLU transpose into a (tile_b//128, 128) slab would remove
    # the remaining write amplification entirely; not needed while MXU-bound.
    out_ref[...] = jnp.broadcast_to(sig, out_ref.shape).astype(out_ref.dtype)


def discriminator_forward(sent_repr, params, *, tile_b=None):
    """sent_repr: (B, H) float32. params: dict of transposed weights / biases."""
    B, H = sent_repr.shape
    Hp = _round_up(H, _hidden_alignment(H))
    tile_b = _choose_tile_b(B, tile_b)
    Bp = _round_up(B, tile_b)
    grid = (Bp // tile_b,)

    # x: pad + pre-cast to bf16 (MXU operand dtype).
    x = jnp.pad(sent_repr.astype(jnp.bfloat16), ((0, Bp - B), (0, Hp - H)))

    def pad_w(w):        # (H, H) -> (Hp, Hp), bf16 for the MXU
        return jnp.pad(w, ((0, Hp - w.shape[0]),
                           (0, Hp - w.shape[1]))).astype(jnp.bfloat16)

    def pad_b(b):        # (1, H) -> (1, Hp), f32
        return jnp.pad(b, ((0, 0), (0, Hp - b.shape[1]))).astype(jnp.float32)

    w1, w2, w3, w4 = [pad_w(params[f"w{i}"]) for i in (1, 2, 3, 4)]
    b1, b2, b3, b4 = [pad_b(params[f"b{i}"]) for i in (1, 2, 3, 4)]
    w5 = pad_b(params["w5"].T)                            # (1, Hp) f32, VPU path
    b5 = params["b5"].reshape(1, 1).astype(jnp.float32)   # scalar, lives in SMEM

    # TODO(synk): once 4*Hp^2*2 bytes (single-buffered) exceeds ~40-48 MiB
    # (Hp >= ~2300 on v7x), stream the four HxH weights per layer from HBM
    # (memory_space=pl.ANY + pltpu.emit_pipeline) instead of holding them
    # resident; unnecessary at these sizes.

    flops = 2 * Bp * (4 * Hp * Hp + Hp)
    bytes_accessed = (4 * Hp * Hp * 2 + 5 * Hp * 4 + 4
                      + Bp * Hp * 2 + Bp * 128 * 2)

    def build(single_buffer_weights):
        if single_buffer_weights:
            # Constant index map -> never re-fetched; a single VMEM buffer is
            # enough (halves resident-weight VMEM vs default double-buffering).
            w_spec = pl.BlockSpec((Hp, Hp), lambda i: (0, 0),
                                  pipeline_mode=pl.Buffered(1))
            bias_spec = pl.BlockSpec((1, Hp), lambda i: (0, 0),
                                     pipeline_mode=pl.Buffered(1))
            w_bufs = 1
        else:
            w_spec = pl.BlockSpec((Hp, Hp), lambda i: (0, 0))
            bias_spec = pl.BlockSpec((1, Hp), lambda i: (0, 0))
            w_bufs = 2

        in_specs = [
            pl.BlockSpec((tile_b, Hp), lambda i: (i, 0)),  # x: pipelined tiles
            w_spec, bias_spec,
            w_spec, bias_spec,
            w_spec, bias_spec,
            w_spec, bias_spec,
            bias_spec,                                     # w5 row (1, Hp)
            pl.BlockSpec(memory_space=pltpu.SMEM),         # b5 scalar
        ]
        out_specs = pl.BlockSpec((tile_b, 128), lambda i: (i, 0))

        # VMEM budget: resident weights/biases, double-buffered x/out tiles,
        # and the f32 per-layer activation staging the compiler must hold.
        vmem_bytes = (w_bufs * (4 * Hp * Hp * 2 + 5 * Hp * 4)
                      + 2 * tile_b * Hp * 2          # x tile (bf16) x2 buffers
                      + 2 * tile_b * 128 * 2         # out tile (bf16) x2 buffers
                      + 3 * tile_b * Hp * 4          # f32 intermediates
                      + (2 << 20))                   # margin
        cap = int(0.9 * _vmem_capacity_bytes())      # generation-aware ceiling
        vmem_limit = int(min(max(vmem_bytes, 32 << 20), cap))

        return pl.pallas_call(
            _discriminator_kernel,
            out_shape=jax.ShapeDtypeStruct((Bp, 128), jnp.bfloat16),
            grid=grid,
            in_specs=in_specs,
            out_specs=out_specs,
            compiler_params=pltpu.CompilerParams(
                dimension_semantics=("parallel",),   # shard batch tiles over TCs
                vmem_limit_bytes=vmem_limit,
            ),
            cost_estimate=pl.CostEstimate(
                flops=flops, transcendentals=Bp, bytes_accessed=bytes_accessed),
        )

    args = (x, w1, b1, w2, b2, w3, b3, w4, b4, w5, b5)
    try:
        out_padded = build(single_buffer_weights=True)(*args)
    except Exception:
        # Fallback for toolchains where pipeline_mode=pl.Buffered(1) is not
        # accepted on the top-level pallas_call pipeline: plain double-buffered
        # resident weights (the previously-validated configuration).
        out_padded = build(single_buffer_weights=False)(*args)

    return out_padded[:B, :1].astype(jnp.float32)


def init_params(key, hidden_size):
    """Deterministic init mirroring the PyTorch module's __init__ semantics:
    fc1..fc3 weights ~ N(0, 0.03); fc4/fc5 weights and ALL biases use PyTorch's
    default Linear init  U(-1/sqrt(fan_in), 1/sqrt(fan_in))."""
    H = hidden_size
    keys = jax.random.split(key, 10)

    def normal_w(k):     # stored as (in, out) == transpose of PyTorch (out, in)
        return 0.03 * jax.random.normal(k, (H, H), dtype=jnp.float32)

    def uniform_w(k, in_f, out_f):
        b = 1.0 / jnp.sqrt(jnp.float32(in_f))
        return jax.random.uniform(k, (in_f, out_f), minval=-b, maxval=b,
                                  dtype=jnp.float32)

    def uniform_b(k, in_f, out_f):
        b = 1.0 / jnp.sqrt(jnp.float32(in_f))
        return jax.random.uniform(k, (1, out_f), minval=-b, maxval=b,
                                  dtype=jnp.float32)

    return {
        "w1": normal_w(keys[0]), "b1": uniform_b(keys[1], H, H),
        "w2": normal_w(keys[2]), "b2": uniform_b(keys[3], H, H),
        "w3": normal_w(keys[4]), "b3": uniform_b(keys[5], H, H),
        "w4": uniform_w(keys[6], H, H), "b4": uniform_b(keys[7], H, H),
        "w5": uniform_w(keys[8], H, 1), "b5": uniform_b(keys[9], H, 1),
    }


def _reference_forward(x, p):
    h = x
    for i in (1, 2, 3, 4):
        h = jnp.maximum(h @ p[f"w{i}"] + p[f"b{i}"], 0.0)
    return jax.nn.sigmoid(h @ p["w5"] + p["b5"])


def _run_case(key, batch, hidden):
    k_in, k_param = jax.random.split(key)
    sent_repr = jax.random.normal(k_in, (batch, hidden), dtype=jnp.float32)
    params = init_params(k_param, hidden)

    out = discriminator_forward(sent_repr, params)
    out = jax.block_until_ready(out)

    ref = _reference_forward(sent_repr, params)
    assert out.shape == (batch, 1), (out.shape, (batch, 1))
    # bf16 MXU operands / bf16 output slab (f32 accumulation) vs f32 reference.
    assert jnp.allclose(out, ref, atol=2e-2, rtol=2e-2), (out, ref)


if __name__ == "__main__":
    key = jax.random.PRNGKey(0)
    k_small, k_large = jax.random.split(key)

    # Small shape: single tile, fully padded hidden dim.
    _run_case(k_small, batch=8, hidden=32)
    # Larger shape: multi-tile grid, padded batch, non-trivial hidden padding.
    _run_case(k_large, batch=300, hidden=384)

    print("KERNEL_OK")
</pallas_src>

<mosaic_0001>
module attributes {stable_mosaic.version = 11 : i64} {
  func.func @_discriminator_kernel(%arg0: i32, %arg1: memref<8x128xbf16, #tpu.memory_space<vmem>>, %arg2: memref<128x128xbf16, #tpu.memory_space<vmem>>, %arg3: memref<1x128xf32, #tpu.memory_space<vmem>>, %arg4: memref<128x128xbf16, #tpu.memory_space<vmem>>, %arg5: memref<1x128xf32, #tpu.memory_space<vmem>>, %arg6: memref<128x128xbf16, #tpu.memory_space<vmem>>, %arg7: memref<1x128xf32, #tpu.memory_space<vmem>>, %arg8: memref<128x128xbf16, #tpu.memory_space<vmem>>, %arg9: memref<1x128xf32, #tpu.memory_space<vmem>>, %arg10: memref<1x128xf32, #tpu.memory_space<vmem>>, %arg11: memref<1x1xf32, #tpu.memory_space<smem>>, %arg12: memref<8x128xbf16, #tpu.memory_space<vmem>>) attributes {dimension_semantics = [#tpu.dimension_semantics<parallel>], iteration_bounds = array<i64: 1>, scalar_prefetch = 0 : i64, scratch_operands = 0 : i64, tpu.core_type = #tpu.core_type<tc>, window_params = [{transform_indices = @transform_0, window_bounds = array<i64: 8, 128>}, {pipeline_mode = #tpu.pipeline_mode<synchronous>, transform_indices = @transform_1, window_bounds = array<i64: 128, 128>}, {pipeline_mode = #tpu.pipeline_mode<synchronous>, transform_indices = @transform_2, window_bounds = array<i64: 1, 128>}, {pipeline_mode = #tpu.pipeline_mode<synchronous>, transform_indices = @transform_3, window_bounds = array<i64: 128, 128>}, {pipeline_mode = #tpu.pipeline_mode<synchronous>, transform_indices = @transform_4, window_bounds = array<i64: 1, 128>}, {pipeline_mode = #tpu.pipeline_mode<synchronous>, transform_indices = @transform_5, window_bounds = array<i64: 128, 128>}, {pipeline_mode = #tpu.pipeline_mode<synchronous>, transform_indices = @transform_6, window_bounds = array<i64: 1, 128>}, {pipeline_mode = #tpu.pipeline_mode<synchronous>, transform_indices = @transform_7, window_bounds = array<i64: 128, 128>}, {pipeline_mode = #tpu.pipeline_mode<synchronous>, transform_indices = @transform_8, window_bounds = array<i64: 1, 128>}, {pipeline_mode = #tpu.pipeline_mode<synchronous>, transform_indices = @transform_9, window_bounds = array<i64: 1, 128>}, {transform_indices = @transform_10, window_bounds = array<i64: 1, 1>}, {transform_indices = @transform_11, window_bounds = array<i64: 8, 128>}]} {
    %c0 = arith.constant 0 : index
    %c0_0 = arith.constant 0 : index
    %0 = vector.load %arg1[%c0, %c0_0] : memref<8x128xbf16, #tpu.memory_space<vmem>>, vector<8x128xbf16>
    %c0_1 = arith.constant 0 : index
    %c0_2 = arith.constant 0 : index
    %1 = vector.load %arg2[%c0_1, %c0_2] : memref<128x128xbf16, #tpu.memory_space<vmem>>, vector<128x128xbf16>
    %cst = arith.constant dense<0.000000e+00> : vector<8x128xf32>
    %2 = tpu.matmul %0, %1, %cst {dimension_numbers = #tpu.dot_dimension_numbers<[1], [0], [0], [1], [0, 0, 1, 1], [], []>} : vector<8x128xbf16>, vector<128x128xbf16>, vector<8x128xf32> -> vector<8x128xf32>
    %c0_3 = arith.constant 0 : index
    %c0_4 = arith.constant 0 : index
    %3 = vector.load %arg3[%c0_3, %c0_4] : memref<1x128xf32, #tpu.memory_space<vmem>>, vector<1x128xf32>
    %4 = vector.broadcast %3 : vector<1x128xf32> to vector<8x128xf32>
    %5 = arith.addf %2, %4 : vector<8x128xf32>
    %cst_5 = arith.constant 0.000000e+00 : f32
    %6 = vector.broadcast %cst_5 : f32 to vector<8x128xf32>
    %7 = arith.maximumf %5, %6 : vector<8x128xf32>
    %8 = arith.truncf %7 : vector<8x128xf32> to vector<8x128xbf16>
    %c0_6 = arith.constant 0 : index
    %c0_7 = arith.constant 0 : index
    %9 = vector.load %arg4[%c0_6, %c0_7] : memref<128x128xbf16, #tpu.memory_space<vmem>>, vector<128x128xbf16>
    %cst_8 = arith.constant dense<0.000000e+00> : vector<8x128xf32>
    %10 = tpu.matmul %8, %9, %cst_8 {dimension_numbers = #tpu.dot_dimension_numbers<[1], [0], [0], [1], [0, 0, 1, 1], [], []>} : vector<8x128xbf16>, vector<128x128xbf16>, vector<8x128xf32> -> vector<8x128xf32>
    %c0_9 = arith.constant 0 : index
    %c0_10 = arith.constant 0 : index
    %11 = vector.load %arg5[%c0_9, %c0_10] : memref<1x128xf32, #tpu.memory_space<vmem>>, vector<1x128xf32>
    %12 = vector.broadcast %11 : vector<1x128xf32> to vector<8x128xf32>
    %13 = arith.addf %10, %12 : vector<8x128xf32>
    %cst_11 = arith.constant 0.000000e+00 : f32
    %14 = vector.broadcast %cst_11 : f32 to vector<8x128xf32>
    %15 = arith.maximumf %13, %14 : vector<8x128xf32>
    %16 = arith.truncf %15 : vector<8x128xf32> to vector<8x128xbf16>
    %c0_12 = arith.constant 0 : index
    %c0_13 = arith.constant 0 : index
    %17 = vector.load %arg6[%c0_12, %c0_13] : memref<128x128xbf16, #tpu.memory_space<vmem>>, vector<128x128xbf16>
    %cst_14 = arith.constant dense<0.000000e+00> : vector<8x128xf32>
    %18 = tpu.matmul %16, %17, %cst_14 {dimension_numbers = #tpu.dot_dimension_numbers<[1], [0], [0], [1], [0, 0, 1, 1], [], []>} : vector<8x128xbf16>, vector<128x128xbf16>, vector<8x128xf32> -> vector<8x128xf32>
    %c0_15 = arith.constant 0 : index
    %c0_16 = arith.constant 0 : index
    %19 = vector.load %arg7[%c0_15, %c0_16] : memref<1x128xf32, #tpu.memory_space<vmem>>, vector<1x128xf32>
    %20 = vector.broadcast %19 : vector<1x128xf32> to vector<8x128xf32>
    %21 = arith.addf %18, %20 : vector<8x128xf32>
    %cst_17 = arith.constant 0.000000e+00 : f32
    %22 = vector.broadcast %cst_17 : f32 to vector<8x128xf32>
    %23 = arith.maximumf %21, %22 : vector<8x128xf32>
    %24 = arith.truncf %23 : vector<8x128xf32> to vector<8x128xbf16>
    %c0_18 = arith.constant 0 : index
    %c0_19 = arith.constant 0 : index
    %25 = vector.load %arg8[%c0_18, %c0_19] : memref<128x128xbf16, #tpu.memory_space<vmem>>, vector<128x128xbf16>
    %cst_20 = arith.constant dense<0.000000e+00> : vector<8x128xf32>
    %26 = tpu.matmul %24, %25, %cst_20 {dimension_numbers = #tpu.dot_dimension_numbers<[1], [0], [0], [1], [0, 0, 1, 1], [], []>} : vector<8x128xbf16>, vector<128x128xbf16>, vector<8x128xf32> -> vector<8x128xf32>
    %c0_21 = arith.constant 0 : index
    %c0_22 = arith.constant 0 : index
    %27 = vector.load %arg9[%c0_21, %c0_22] : memref<1x128xf32, #tpu.memory_space<vmem>>, vector<1x128xf32>
    %28 = vector.broadcast %27 : vector<1x128xf32> to vector<8x128xf32>
    %29 = arith.addf %26, %28 : vector<8x128xf32>
    %cst_23 = arith.constant 0.000000e+00 : f32
    %30 = vector.broadcast %cst_23 : f32 to vector<8x128xf32>
    %31 = arith.maximumf %29, %30 : vector<8x128xf32>
    %c0_24 = arith.constant 0 : index
    %c0_25 = arith.constant 0 : index
    %32 = vector.load %arg10[%c0_24, %c0_25] : memref<1x128xf32, #tpu.memory_space<vmem>>, vector<1x128xf32>
    %33 = vector.broadcast %32 : vector<1x128xf32> to vector<8x128xf32>
    %34 = arith.mulf %31, %33 : vector<8x128xf32>
    %cst_26 = arith.constant dense<0.000000e+00> : vector<8xf32>
    %35 = vector.multi_reduction <add>, %34, %cst_26 [1] : vector<8x128xf32> to vector<8xf32>
    %36 = vector.shape_cast %35 : vector<8xf32> to vector<8x1xf32>
    %c0_27 = arith.constant 0 : index
    %c0_28 = arith.constant 0 : index
    %37 = memref.load %arg11[%c0_27, %c0_28] : memref<1x1xf32, #tpu.memory_space<smem>>
    %38 = vector.broadcast %37 : f32 to vector<8x1xf32>
    %39 = arith.addf %36, %38 : vector<8x1xf32>
    %40 = arith.negf %39 : vector<8x1xf32>
    %41 = math.exp %40 : vector<8x1xf32>
    %cst_29 = arith.constant 1.000000e+00 : f32
    %42 = vector.broadcast %cst_29 : f32 to vector<8x1xf32>
    %43 = arith.addf %42, %41 : vector<8x1xf32>
    %44 = arith.divf %42, %43 : vector<8x1xf32>
    %45 = vector.shape_cast %44 : vector<8x1xf32> to vector<8x1xf32>
    %46 = vector.broadcast %45 : vector<8x1xf32> to vector<8x128xf32>
    %47 = arith.truncf %46 : vector<8x128xf32> to vector<8x128xbf16>
    %c0_30 = arith.constant 0 : index
    %c0_31 = arith.constant 0 : index
    %48 = vector.load %arg12[%c0_30, %c0_31] : memref<8x128xbf16, #tpu.memory_space<vmem>>, vector<8x128xbf16>
    tpu.vector_store %arg12[%c0_30, %c0_31], %47 {strides = array<i32>} : memref<8x128xbf16, #tpu.memory_space<vmem>>, vector<8x128xbf16>,
    return
  }
  func.func @transform_0(%arg0: i32) -> (i32, i32) {
    %c0_i32 = arith.constant 0 : i32
    %c0_i32_0 = arith.constant 0 : i32
    return %arg0, %c0_i32 : i32, i32
  }
  func.func @transform_1(%arg0: i32) -> (i32, i32) {
    %c0_i32 = arith.constant 0 : i32
    %c0_i32_0 = arith.constant 0 : i32
    %c0_i32_1 = arith.constant 0 : i32
    return %c0_i32, %c0_i32_0 : i32, i32
  }
  func.func @transform_2(%arg0: i32) -> (i32, i32) {
    %c0_i32 = arith.constant 0 : i32
    %c0_i32_0 = arith.constant 0 : i32
    %c0_i32_1 = arith.constant 0 : i32
    return %c0_i32, %c0_i32_0 : i32, i32
  }
  func.func @transform_3(%arg0: i32) -> (i32, i32) {
    %c0_i32 = arith.constant 0 : i32
    %c0_i32_0 = arith.constant 0 : i32
    %c0_i32_1 = arith.constant 0 : i32
    return %c0_i32, %c0_i32_0 : i32, i32
  }
  func.func @transform_4(%arg0: i32) -> (i32, i32) {
    %c0_i32 = arith.constant 0 : i32
    %c0_i32_0 = arith.constant 0 : i32
    %c0_i32_1 = arith.constant 0 : i32
    return %c0_i32, %c0_i32_0 : i32, i32
  }
  func.func @transform_5(%arg0: i32) -> (i32, i32) {
    %c0_i32 = arith.constant 0 : i32
    %c0_i32_0 = arith.constant 0 : i32
    %c0_i32_1 = arith.constant 0 : i32
    return %c0_i32, %c0_i32_0 : i32, i32
  }
  func.func @transform_6(%arg0: i32) -> (i32, i32) {
    %c0_i32 = arith.constant 0 : i32
    %c0_i32_0 = arith.constant 0 : i32
    %c0_i32_1 = arith.constant 0 : i32
    return %c0_i32, %c0_i32_0 : i32, i32
  }
  func.func @transform_7(%arg0: i32) -> (i32, i32) {
    %c0_i32 = arith.constant 0 : i32
    %c0_i32_0 = arith.constant 0 : i32
    %c0_i32_1 = arith.constant 0 : i32
    return %c0_i32, %c0_i32_0 : i32, i32
  }
  func.func @transform_8(%arg0: i32) -> (i32, i32) {
    %c0_i32 = arith.constant 0 : i32
    %c0_i32_0 = arith.constant 0 : i32
    %c0_i32_1 = arith.constant 0 : i32
    return %c0_i32, %c0_i32_0 : i32, i32
  }
  func.func @transform_9(%arg0: i32) -> (i32, i32) {
    %c0_i32 = arith.constant 0 : i32
    %c0_i32_0 = arith.constant 0 : i32
    %c0_i32_1 = arith.constant 0 : i32
    return %c0_i32, %c0_i32_0 : i32, i32
  }
  func.func @transform_10(%arg0: i32) -> (i32, i32) {
    %c0_i32 = arith.constant 0 : i32
    %c0_i32_0 = arith.constant 0 : i32
    %c0_i32_1 = arith.constant 0 : i32
    return %c0_i32, %c0_i32_0 : i32, i32
  }
  func.func @transform_11(%arg0: i32) -> (i32, i32) {
    %c0_i32 = arith.constant 0 : i32
    %c0_i32_0 = arith.constant 0 : i32
    return %arg0, %c0_i32 : i32, i32
  }
}

module attributes {stable_mosaic.version = 11 : i64} {
  func.func @_discriminator_kernel(%arg0: i32, %arg1: memref<8x128xbf16, #tpu.memory_space<vmem>>, %arg2: memref<128x128xbf16, #tpu.memory_space<vmem>>, %arg3: memref<1x128xf32, #tpu.memory_space<vmem>>, %arg4: memref<128x128xbf16, #tpu.memory_space<vmem>>, %arg5: memref<1x128xf32, #tpu.memory_space<vmem>>, %arg6: memref<128x128xbf16, #tpu.memory_space<vmem>>, %arg7: memref<1x128xf32, #tpu.memory_space<vmem>>, %arg8: memref<128x128xbf16, #tpu.memory_space<vmem>>, %arg9: memref<1x128xf32, #tpu.memory_space<vmem>>, %arg10: memref<1x128xf32, #tpu.memory_space<vmem>>, %arg11: memref<1x1xf32, #tpu.memory_space<smem>>, %arg12: memref<8x128xbf16, #tpu.memory_space<vmem>>) attributes {dimension_semantics = [#tpu.dimension_semantics<parallel>], iteration_bounds = array<i64: 1>, scalar_prefetch = 0 : i64, scratch_operands = 0 : i64, tpu.core_type = #tpu.core_type<tc>, window_params = [{transform_indices = @transform_0, window_bounds = array<i64: 8, 128>}, {pipeline_mode = #tpu.pipeline_mode<synchronous>, transform_indices = @transform_1, window_bounds = array<i64: 128, 128>}, {pipeline_mode = #tpu.pipeline_mode<synchronous>, transform_indices = @transform_2, window_bounds = array<i64: 1, 128>}, {pipeline_mode = #tpu.pipeline_mode<synchronous>, transform_indices = @transform_3, window_bounds = array<i64: 128, 128>}, {pipeline_mode = #tpu.pipeline_mode<synchronous>, transform_indices = @transform_4, window_bounds = array<i64: 1, 128>}, {pipeline_mode = #tpu.pipeline_mode<synchronous>, transform_indices = @transform_5, window_bounds = array<i64: 128, 128>}, {pipeline_mode = #tpu.pipeline_mode<synchronous>, transform_indices = @transform_6, window_bounds = array<i64: 1, 128>}, {pipeline_mode = #tpu.pipeline_mode<synchronous>, transform_indices = @transform_7, window_bounds = array<i64: 128, 128>}, {pipeline_mode = #tpu.pipeline_mode<synchronous>, transform_indices = @transform_8, window_bounds = array<i64: 1, 128>}, {pipeline_mode = #tpu.pipeline_mode<synchronous>, transform_indices = @transform_9, window_bounds = array<i64: 1, 128>}, {transform_indices = @transform_10, window_bounds = array<i64: 1, 1>}, {transform_indices = @transform_11, window_bounds = array<i64: 8, 128>}]} {
    %c0 = arith.constant 0 : index
    %c0_0 = arith.constant 0 : index
    %0 = vector.load %arg1[%c0, %c0_0] : memref<8x128xbf16, #tpu.memory_space<vmem>>, vector<8x128xbf16>
    %c0_1 = arith.constant 0 : index
    %c0_2 = arith.constant 0 : index
    %1 = vector.load %arg2[%c0_1, %c0_2] : memref<128x128xbf16, #tpu.memory_space<vmem>>, vector<128x128xbf16>
    %cst = arith.constant dense<0.000000e+00> : vector<8x128xf32>
    %2 = tpu.matmul %0, %1, %cst {dimension_numbers = #tpu.dot_dimension_numbers<[1], [0], [0], [1], [0, 0, 1, 1], [], []>} : vector<8x128xbf16>, vector<128x128xbf16>, vector<8x128xf32> -> vector<8x128xf32>
    %c0_3 = arith.constant 0 : index
    %c0_4 = arith.constant 0 : index
    %3 = vector.load %arg3[%c0_3, %c0_4] : memref<1x128xf32, #tpu.memory_space<vmem>>, vector<1x128xf32>
    %4 = vector.broadcast %3 : vector<1x128xf32> to vector<8x128xf32>
    %5 = arith.addf %2, %4 : vector<8x128xf32>
    %cst_5 = arith.constant 0.000000e+00 : f32
    %6 = vector.broadcast %cst_5 : f32 to vector<8x128xf32>
    %7 = arith.maximumf %5, %6 : vector<8x128xf32>
    %8 = arith.truncf %7 : vector<8x128xf32> to vector<8x128xbf16>
    %c0_6 = arith.constant 0 : index
    %c0_7 = arith.constant 0 : index
    %9 = vector.load %arg4[%c0_6, %c0_7] : memref<128x128xbf16, #tpu.memory_space<vmem>>, vector<128x128xbf16>
    %cst_8 = arith.constant dense<0.000000e+00> : vector<8x128xf32>
    %10 = tpu.matmul %8, %9, %cst_8 {dimension_numbers = #tpu.dot_dimension_numbers<[1], [0], [0], [1], [0, 0, 1, 1], [], []>} : vector<8x128xbf16>, vector<128x128xbf16>, vector<8x128xf32> -> vector<8x128xf32>
    %c0_9 = arith.constant 0 : index
    %c0_10 = arith.constant 0 : index
    %11 = vector.load %arg5[%c0_9, %c0_10] : memref<1x128xf32, #tpu.memory_space<vmem>>, vector<1x128xf32>
    %12 = vector.broadcast %11 : vector<1x128xf32> to vector<8x128xf32>
    %13 = arith.addf %10, %12 : vector<8x128xf32>
    %cst_11 = arith.constant 0.000000e+00 : f32
    %14 = vector.broadcast %cst_11 : f32 to vector<8x128xf32>
    %15 = arith.maximumf %13, %14 : vector<8x128xf32>
    %16 = arith.truncf %15 : vector<8x128xf32> to vector<8x128xbf16>
    %c0_12 = arith.constant 0 : index
    %c0_13 = arith.constant 0 : index
    %17 = vector.load %arg6[%c0_12, %c0_13] : memref<128x128xbf16, #tpu.memory_space<vmem>>, vector<128x128xbf16>
    %cst_14 = arith.constant dense<0.000000e+00> : vector<8x128xf32>
    %18 = tpu.matmul %16, %17, %cst_14 {dimension_numbers = #tpu.dot_dimension_numbers<[1], [0], [0], [1], [0, 0, 1, 1], [], []>} : vector<8x128xbf16>, vector<128x128xbf16>, vector<8x128xf32> -> vector<8x128xf32>
    %c0_15 = arith.constant 0 : index
    %c0_16 = arith.constant 0 : index
    %19 = vector.load %arg7[%c0_15, %c0_16] : memref<1x128xf32, #tpu.memory_space<vmem>>, vector<1x128xf32>
    %20 = vector.broadcast %19 : vector<1x128xf32> to vector<8x128xf32>
    %21 = arith.addf %18, %20 : vector<8x128xf32>
    %cst_17 = arith.constant 0.000000e+00 : f32
    %22 = vector.broadcast %cst_17 : f32 to vector<8x128xf32>
    %23 = arith.maximumf %21, %22 : vector<8x128xf32>
    %24 = arith.truncf %23 : vector<8x128xf32> to vector<8x128xbf16>
    %c0_18 = arith.constant 0 : index
    %c0_19 = arith.constant 0 : index
    %25 = vector.load %arg8[%c0_18, %c0_19] : memref<128x128xbf16, #tpu.memory_space<vmem>>, vector<128x128xbf16>
    %cst_20 = arith.constant dense<0.000000e+00> : vector<8x128xf32>
    %26 = tpu.matmul %24, %25, %cst_20 {dimension_numbers = #tpu.dot_dimension_numbers<[1], [0], [0], [1], [0, 0, 1, 1], [], []>} : vector<8x128xbf16>, vector<128x128xbf16>, vector<8x128xf32> -> vector<8x128xf32>
    %c0_21 = arith.constant 0 : index
    %c0_22 = arith.constant 0 : index
    %27 = vector.load %arg9[%c0_21, %c0_22] : memref<1x128xf32, #tpu.memory_space<vmem>>, vector<1x128xf32>
    %28 = vector.broadcast %27 : vector<1x128xf32> to vector<8x128xf32>
    %29 = arith.addf %26, %28 : vector<8x128xf32>
    %cst_23 = arith.constant 0.000000e+00 : f32
    %30 = vector.broadcast %cst_23 : f32 to vector<8x128xf32>
    %31 = arith.maximumf %29, %30 : vector<8x128xf32>
    %c0_24 = arith.constant 0 : index
    %c0_25 = arith.constant 0 : index
    %32 = vector.load %arg10[%c0_24, %c0_25] : memref<1x128xf32, #tpu.memory_space<vmem>>, vector<1x128xf32>
    %33 = vector.broadcast %32 : vector<1x128xf32> to vector<8x128xf32>
    %34 = arith.mulf %31, %33 : vector<8x128xf32>
    %cst_26 = arith.constant dense<0.000000e+00> : vector<8xf32>
    %35 = vector.multi_reduction <add>, %34, %cst_26 [1] : vector<8x128xf32> to vector<8xf32>
    %36 = vector.shape_cast %35 : vector<8xf32> to vector<8x1xf32>
    %c0_27 = arith.constant 0 : index
    %c0_28 = arith.constant 0 : index
    %37 = memref.load %arg11[%c0_27, %c0_28] : memref<1x1xf32, #tpu.memory_space<smem>>
    %38 = vector.broadcast %37 : f32 to vector<8x1xf32>
    %39 = arith.addf %36, %38 : vector<8x1xf32>
    %40 = arith.negf %39 : vector<8x1xf32>
    %41 = math.exp %40 : vector<8x1xf32>
    %cst_29 = arith.constant 1.000000e+00 : f32
    %42 = vector.broadcast %cst_29 : f32 to vector<8x1xf32>
    %43 = arith.addf %42, %41 : vector<8x1xf32>
    %44 = arith.divf %42, %43 : vector<8x1xf32>
    %45 = vector.shape_cast %44 : vector<8x1xf32> to vector<8x1xf32>
    %46 = vector.broadcast %45 : vector<8x1xf32> to vector<8x128xf32>
    %47 = arith.truncf %46 : vector<8x128xf32> to vector<8x128xbf16>
    %c0_30 = arith.constant 0 : index
    %c0_31 = arith.constant 0 : index
    %48 = vector.load %arg12[%c0_30, %c0_31] : memref<8x128xbf16, #tpu.memory_space<vmem>>, vector<8x128xbf16>
    tpu.vector_store %arg12[%c0_30, %c0_31], %47 {strides = array<i32>} : memref<8x128xbf16, #tpu.memory_space<vmem>>, vector<8x128xbf16>,
    return
  }
  func.func @transform_0(%arg0: i32) -> (i32, i32) {
    %c0_i32 = arith.constant 0 : i32
    %c0_i32_0 = arith.constant 0 : i32
    return %arg0, %c0_i32 : i32, i32
  }
  func.func @transform_1(%arg0: i32) -> (i32, i32) {
    %c0_i32 = arith.constant 0 : i32
    %c0_i32_0 = arith.constant 0 : i32
    %c0_i32_1 = arith.constant 0 : i32
    return %c0_i32, %c0_i32_0 : i32, i32
  }
  func.func @transform_2(%arg0: i32) -> (i32, i32) {
    %c0_i32 = arith.constant 0 : i32
    %c0_i32_0 = arith.constant 0 : i32
    %c0_i32_1 = arith.constant 0 : i32
    return %c0_i32, %c0_i32_0 : i32, i32
  }
  func.func @transform_3(%arg0: i32) -> (i32, i32) {
    %c0_i32 = arith.constant 0 : i32
    %c0_i32_0 = arith.constant 0 : i32
    %c0_i32_1 = arith.constant 0 : i32
    return %c0_i32, %c0_i32_0 : i32, i32
  }
  func.func @transform_4(%arg0: i32) -> (i32, i32) {
    %c0_i32 = arith.constant 0 : i32
    %c0_i32_0 = arith.constant 0 : i32
    %c0_i32_1 = arith.constant 0 : i32
    return %c0_i32, %c0_i32_0 : i32, i32
  }
  func.func @transform_5(%arg0: i32) -> (i32, i32) {
    %c0_i32 = arith.constant 0 : i32
    %c0_i32_0 = arith.constant 0 : i32
    %c0_i32_1 = arith.constant 0 : i32
    return %c0_i32, %c0_i32_0 : i32, i32
  }
  func.func @transform_6(%arg0: i32) -> (i32, i32) {
    %c0_i32 = arith.constant 0 : i32
    %c0_i32_0 = arith.constant 0 : i32
    %c0_i32_1 = arith.constant 0 : i32
    return %c0_i32, %c0_i32_0 : i32, i32
  }
  func.func @transform_7(%arg0: i32) -> (i32, i32) {
    %c0_i32 = arith.constant 0 : i32
    %c0_i32_0 = arith.constant 0 : i32
    %c0_i32_1 = arith.constant 0 : i32
    return %c0_i32, %c0_i32_0 : i32, i32
  }
  func.func @transform_8(%arg0: i32) -> (i32, i32) {
    %c0_i32 = arith.constant 0 : i32
    %c0_i32_0 = arith.constant 0 : i32
    %c0_i32_1 = arith.constant 0 : i32
    return %c0_i32, %c0_i32_0 : i32, i32
  }
  func.func @transform_9(%arg0: i32) -> (i32, i32) {
    %c0_i32 = arith.constant 0 : i32
    %c0_i32_0 = arith.constant 0 : i32
    %c0_i32_1 = arith.constant 0 : i32
    return %c0_i32, %c0_i32_0 : i32, i32
  }
  func.func @transform_10(%arg0: i32) -> (i32, i32) {
    %c0_i32 = arith.constant 0 : i32
    %c0_i32_0 = arith.constant 0 : i32
    %c0_i32_1 = arith.constant 0 : i32
    return %c0_i32, %c0_i32_0 : i32, i32
  }
  func.func @transform_11(%arg0: i32) -> (i32, i32) {
    %c0_i32 = arith.constant 0 : i32
    %c0_i32_0 = arith.constant 0 : i32
    return %arg0, %c0_i32 : i32, i32
  }
}

</mosaic_0001>

<bundles_post_ra>
// kernel: tpu_custom_call.1
= control target key start
LH: loop header
LB: loop body
LE: loop exit
PB: predicated region body
PF: predicated region fallthrough
CT: control target
= control target key end

     0   :  { %17 = vsyncpa [#allocation4], 0  ;;  %s1083_s0 = inlined_call_operand.hbm [shape: bf16[8,128], index: 0, kind: input, shape index: {}]   ;;  %s1084_s1 = inlined_call_operand.hbm [shape: bf16[128,128], index: 1, kind: input, shape index: {}]   ;;  %s1085_s2 = inlined_call_operand.vmem [shape: f32[1,128], index: 2, kind: input, shape index: {}]   ;;  %s1086_s3 = inlined_call_operand.hbm [shape: bf16[128,128], index: 3, kind: input, shape index: {}]   ;;  %s1087_s4 = inlined_call_operand.vmem [shape: f32[1,128], index: 4, kind: input, shape index: {}]   ;;  %s1088_s5 = inlined_call_operand.hbm [shape: bf16[128,128], index: 5, kind: input, shape index: {}]   ;;  %s1089_s6 = inlined_call_operand.vmem [shape: f32[1,128], index: 6, kind: input, shape index: {}]   ;;  %s1090_s7 = inlined_call_operand.hbm [shape: bf16[128,128], index: 7, kind: input, shape index: {}]   ;;  %s1091_s8 = inlined_call_operand.vmem [shape: f32[1,128], index: 8, kind: input, shape index: {}]   ;;  %s1092_s9 = inlined_call_operand.vmem [shape: f32[1,128], index: 9, kind: input, shape index: {}]   ;;  %s1093_s10 = inlined_call_operand.<no memory space> [shape: f32[1,1], index: 10, kind: input, shape index: {}]   ;;  %s1094_s11 = inlined_call_operand.hbm [shape: bf16[8,128], index: 11, kind: output, shape index: {}]  }
   0x1   :  { %18 = vsyncpa [#allocation7], 0 }
   0x2   :  { %19 = vsyncpa [#allocation10], 0 }
   0x3   :  { %20 = vsyncpa [#allocation5], 0  ;;  %s925_s17 = smov [#allocation6]  }
   0x4   :  { %s36_s18 = sshll.u32 %s925_s17, 4  ;;  %s37_s18 = int_to_ptr.vmem [resolvable:$true] %s36_s18 }
   0x5   :  { %s805_s19 = scalar_lea.vmem %s37_s18, 1024  ;;  %p810_p1 = scmp.lt.s32.totalorder %s37_s18, %s37_s18 }
   0x6   :  { %p806_p0 = scmp.ne.s32.totalorder %s37_s18, %s805_s19  ;;  %p811_p2 = scmp.lt.s32.totalorder %s805_s19, %s805_s19 }
   0x8   :  { %p812_p3 = por %p811_p2, %p810_p1 }
   0xa   :  { %p813_p4 = pnand %p812_p3, %p806_p0 }
   0xc   :  { %816 = shalt.err (!%p813_p4)
}
   0xd   :  { %s926_s20 = smov 64   ;;  %s927_s21 = smov 4  }
   0xe   :  { %42 = dma.hbm_to_vmem [thread:$0]  %s1084_s1, 1024, %s37_s18, [#allocation7], %s926_s20, %s926_s20, %s927_s21  }
   0xf   :  { %s928_s24 = smov [#allocation9]   ;;  %s929_s26 = smov [#allocation3]  }
  0x10   :  { %s64_s25 = sshll.u32 %s928_s24, 4  ;;  %s27_s27 = sshll.u32 %s929_s26, 4  ;;  %s65_s25 = int_to_ptr.vmem [resolvable:$true] %s64_s25  ;;  %s28_s27 = int_to_ptr.vmem [resolvable:$true] %s27_s27 }
  0x11   :  { %s825_s28 = scalar_lea.vmem %s65_s25, 1024  ;;  %p830_p6 = scmp.lt.s32.totalorder %s65_s25, %s65_s25 }
  0x12   :  { %p826_p5 = scmp.ne.s32.totalorder %s65_s25, %s825_s28  ;;  %p831_p7 = scmp.lt.s32.totalorder %s825_s28, %s825_s28 }
  0x14   :  { %p832_p8 = por %p831_p7, %p830_p6 }
  0x16   :  { %p833_p9 = pnand %p832_p8, %p826_p5 }
  0x18   :  { %836 = shalt.err (!%p833_p9)
}
  0x19   :  { %70 = dma.hbm_to_vmem [thread:$0]  %s1088_s5, 1024, %s65_s25, [#allocation10], %s926_s20, %s926_s20, %s927_s21  }
  0x1a   :  { %s845_s1 = scalar_lea.vmem %s28_s27, 64  ;;  %p850_p11 = scmp.lt.s32.totalorder %s28_s27, %s28_s27 }
  0x1b   :  { %p846_p10 = scmp.ne.s32.totalorder %s28_s27, %s845_s1  ;;  %p851_p12 = scmp.lt.s32.totalorder %s845_s1, %s845_s1 }
  0x1d   :  { %p852_p13 = por %p851_p12, %p850_p11 }
  0x1f   :  { %p853_p0 = pnand %p852_p13, %p846_p10 }
  0x21   :  { %856 = shalt.err (!%p853_p0)
}
  0x22   :  { %30 = dma.hbm_to_vmem [thread:$0]  %s1083_s0, 64, %s28_s27, [#allocation4]  }
  0x23   :  { %s930_s14 = smov [#allocation8]   ;;  %s931_s16 = smov [#allocation11]  }
  0x24   :  { %s50_s15 = sshll.u32 %s930_s14, 4  ;;  %s78_s17 = sshll.u32 %s931_s16, 4  ;;  %s51_s15 = int_to_ptr.vmem [resolvable:$true] %s50_s15  ;;  %s79_s17 = int_to_ptr.vmem [resolvable:$true] %s78_s17 }
  0x25   :  { %s865_s18 = scalar_lea.vmem %s51_s15, 1024  ;;  %p870_p2 = scmp.lt.s32.totalorder %s51_s15, %s51_s15 }
  0x26   :  { %p866_p1 = scmp.ne.s32.totalorder %s51_s15, %s865_s18  ;;  %p871_p3 = scmp.lt.s32.totalorder %s865_s18, %s865_s18 }
  0x28   :  { %p872_p4 = por %p871_p3, %p870_p2 }
  0x2a   :  { %p873_p5 = pnand %p872_p4, %p866_p1 }
  0x2c   :  { %876 = shalt.err (!%p873_p5)
}
  0x2d   :  { %56 = dma.hbm_to_vmem [thread:$0]  %s1086_s3, 1024, %s51_s15, [#allocation7], %s926_s20, %s926_s20, %s927_s21  }
  0x2e   :  { %s885_s0 = scalar_lea.vmem %s79_s17, 1024  ;;  %p890_p7 = scmp.lt.s32.totalorder %s79_s17, %s79_s17 }
  0x2f   :  { %p886_p6 = scmp.ne.s32.totalorder %s79_s17, %s885_s0  ;;  %p891_p8 = scmp.lt.s32.totalorder %s885_s0, %s885_s0 }
  0x31   :  { %p892_p9 = por %p891_p8, %p890_p7 }
  0x33   :  { %p893_p10 = pnand %p892_p9, %p886_p6 }
  0x35   :  { %896 = shalt.err (!%p893_p10)
}
  0x36   :  { %84 = dma.hbm_to_vmem [thread:$0]  %s1090_s7, 1024, %s79_s17, [#allocation10], %s926_s20, %s926_s20, %s927_s21  }
  0x37   :  { %917 = dma.done.wait [#allocation4], 64  }
  0x38   :  { %918 = vsyncadd [#allocation4], 4294967232 }
  0x39   :  { %919 = dma.done.wait [#allocation7], 2048  }
  0x3a   :  { %920 = vsyncadd [#allocation7], 4294965248 }
  0x3b   :  { %921 = dma.done.wait [#allocation10], 2048  }
  0x3c   :  { %922 = vsyncadd [#allocation10], 4294965248  ;;  %v932_v0 = vmov 0.0   ;;  %vm933_vm0 = vmmov 0   ;;  %v761_v1 = vld [vmem:[#allocation6 + $0x38] sm:$0xff]   ;;  %v762_v2 = vld [vmem:[#allocation6 + $0x30] sm:$0xff]  }
  0x3d   :  { %671 = vmatprep.subr.bf16.mxu0 %v932_v0  ;;  %687 = vmatprep.mubr.msk.bf16.mxu0 %vm933_vm0, %v932_v0  ;;  %v763_v3 = vld [vmem:[#allocation6 + $0x28] sm:$0xff]   ;;  %v769_v4 = vld [vmem:[#allocation8 + $0x38] sm:$0xff]   ;;  %v764_v5 = vld [vmem:[#allocation6 + $0x20] sm:$0xff]  }
  0x3e   :  { %691 = vmatprep.subr.bf16.mxu1 %v932_v0  ;;  %707 = vmatprep.mubr.msk.bf16.mxu1 %vm933_vm0, %v932_v0  ;;  %v770_v6 = vld [vmem:[#allocation8 + $0x30] sm:$0xff]   ;;  %v765_v7 = vld [vmem:[#allocation6 + $0x18] sm:$0xff]   ;;  %v771_v8 = vld [vmem:[#allocation8 + $0x28] sm:$0xff]  }
  0x3f   :  { %672 = vmatpush3.bf16.msra.mxu0 %v761_v1  ;;  %692 = vmatpush3.bf16.msra.mxu1 %v769_v4  ;;  %v766_v9 = vld [vmem:[#allocation6 + $0x10] sm:$0xff]   ;;  %v772_v10 = vld [vmem:[#allocation8 + $0x20] sm:$0xff]   ;;  %v767_v11 = vld [vmem:[#allocation6 + $0x8] sm:$0xff]  }
  0x40   :  { %673 = vmatprep.subr.bf16.mxu0 %v932_v0  ;;  %693 = vmatprep.subr.bf16.mxu1 %v932_v0  ;;  %v773_v12 = vld [vmem:[#allocation8 + $0x18] sm:$0xff]   ;;  %v768_v13 = vld [vmem:[#allocation6] sm:$0xff]   ;;  %v774_v14 = vld [vmem:[#allocation8 + $0x10] sm:$0xff]  }
  0x41   :  { %v107_v15 = vld [vmem:[#allocation3] sm:$0xf]  ;;  %v775_v16 = vld [vmem:[#allocation8 + $0x8] sm:$0xff]   ;;  %v776_v17 = vld [vmem:[#allocation8] sm:$0xff]  }
  0x42   :  { %v777_v18 = vld [vmem:[#allocation9 + $0x38] sm:$0xff]   ;;  %v778_v19 = vld [vmem:[#allocation9 + $0x30] sm:$0xff]   ;;  %v779_v20 = vld [vmem:[#allocation9 + $0x28] sm:$0xff]  }
  0x43   :  { %674 = vmatpush3.bf16.msra.mxu0 %v762_v2  ;;  %694 = vmatpush3.bf16.msra.mxu1 %v770_v6  ;;  %v780_v21 = vld [vmem:[#allocation9 + $0x20] sm:$0xff]   ;;  %v781_v22 = vld [vmem:[#allocation9 + $0x18] sm:$0xff]   ;;  %v782_v23 = vld [vmem:[#allocation9 + $0x10] sm:$0xff]  }
  0x44   :  { %675 = vmatprep.subr.bf16.mxu0 %v932_v0  ;;  %695 = vmatprep.subr.bf16.mxu1 %v932_v0  ;;  %v597_v24 = vld [vmem:[%s1085_s2] ss:$0 sm:$0xff]  ;;  %v783_v32 = vld [vmem:[#allocation9 + $0x8] sm:$0xff]   ;;  %v784_v33 = vld [vmem:[#allocation9] sm:$0xff]  }
  0x45   :  { %v785_v34 = vld [vmem:[#allocation11 + $0x38] sm:$0xff]   ;;  %v786_v35 = vld [vmem:[#allocation11 + $0x30] sm:$0xff]   ;;  %v787_v36 = vld [vmem:[#allocation11 + $0x28] sm:$0xff]  }
  0x46   :  { %v788_v37 = vld [vmem:[#allocation11 + $0x20] sm:$0xff]   ;;  %v789_v38 = vld [vmem:[#allocation11 + $0x18] sm:$0xff]   ;;  %v790_v39 = vld [vmem:[#allocation11 + $0x10] sm:$0xff]  }
  0x47   :  { %676 = vmatpush3.bf16.msra.mxu0 %v763_v3  ;;  %696 = vmatpush3.bf16.msra.mxu1 %v771_v8  ;;  %v606_v40 = vld [vmem:[%s1087_s4] ss:$0 sm:$0xff]  ;;  %v791_v48 = vld [vmem:[#allocation11 + $0x8] sm:$0xff]   ;;  %v792_v49 = vld [vmem:[#allocation11] sm:$0xff]   ;;  %v570_v3 = vstv %s1093_s10 }
  0x48   :  { %677 = vmatprep.subr.bf16.mxu0 %v932_v0  ;;  %697 = vmatprep.subr.bf16.mxu1 %v932_v0  ;;  %v615_v50 = vld [vmem:[%s1089_s6] ss:$0 sm:$0xff] }
  0x49   :  { %v624_v58 = vld [vmem:[%s1091_s8] ss:$0 sm:$0xff]  ;;  %s934_s8 = smov [#allocation12]  }
  0x4a   :  { %v633_v62 = vld [vmem:[%s1092_s9] ss:$0 sm:$0xff]  ;;  %s586_s29 = sshll.u32 %s934_s8, 4  ;;  %s587_s29 = int_to_ptr.vmem [resolvable:$true] %s586_s29 }
  0x4b   :  { %678 = vmatpush3.bf16.msra.mxu0 %v764_v5  ;;  %698 = vmatpush3.bf16.msra.mxu1 %v772_v10  ;;  %s897_s9 = scalar_lea.vmem %s587_s29, 64  ;;  %p902_p12 = scmp.lt.s32.totalorder %s587_s29, %s587_s29 }
  0x4c   :  { %679 = vmatprep.subr.bf16.mxu0 %v932_v0  ;;  %699 = vmatprep.subr.bf16.mxu1 %v932_v0  ;;  %p898_p11 = scmp.ne.s32.totalorder %s587_s29, %s897_s9  ;;  %p903_p13 = scmp.lt.s32.totalorder %s897_s9, %s897_s9 }
  0x4e   :  { %p904_p0 = por %p903_p13, %p902_p12 }
  0x4f   :  { %680 = vmatpush3.bf16.msra.mxu0 %v765_v7  ;;  %700 = vmatpush3.bf16.msra.mxu1 %v773_v12 }
  0x50   :  { %681 = vmatprep.subr.bf16.mxu0 %v932_v0  ;;  %701 = vmatprep.subr.bf16.mxu1 %v932_v0  ;;  %p905_p1 = pnand %p904_p0, %p898_p11 }
  0x53   :  { %682 = vmatpush3.bf16.msra.mxu0 %v766_v9  ;;  %702 = vmatpush3.bf16.msra.mxu1 %v774_v14 }
  0x54   :  { %683 = vmatprep.subr.bf16.mxu0 %v932_v0  ;;  %703 = vmatprep.subr.bf16.mxu1 %v932_v0 }
  0x57   :  { %684 = vmatpush3.bf16.msra.mxu0 %v767_v11  ;;  %704 = vmatpush3.bf16.msra.mxu1 %v775_v16 }
  0x58   :  { %685 = vmatprep.subr.bf16.mxu0 %v932_v0  ;;  %705 = vmatprep.subr.bf16.mxu1 %v932_v0 }
  0x5b   :  { %686 = vmatpush3.bf16.msra.mxu0 %v768_v13  ;;  %706 = vmatpush3.bf16.msra.mxu1 %v776_v17 }
  0x5c   :  { %711 = vmatprep.subr.bf16.mxu0 %v932_v0  ;;  %731 = vmatprep.subr.bf16.mxu1 %v932_v0 }
  0x5e   :  { %688 = vmatmul.mubr.bf16.vlgmr.msra.gmra.mxu0 %v107_v15 }
  0x5f   :  { %727 = vmatprep.mubr.msk.bf16.mxu0 %vm933_vm0, %v932_v0  ;;  %712 = vmatpush3.bf16.msra.mxu0 %v777_v18 }
  0x60   :  { %713 = vmatprep.subr.bf16.mxu0 %v932_v0 }
  0x63   :  { %714 = vmatpush3.bf16.msra.mxu0 %v778_v19 }
  0x64   :  { %715 = vmatprep.subr.bf16.mxu0 %v932_v0 }
  0x67   :  { %716 = vmatpush3.bf16.msra.mxu0 %v779_v20 }
  0x68   :  { %717 = vmatprep.subr.bf16.mxu0 %v932_v0 }
  0x6b   :  { %718 = vmatpush3.bf16.msra.mxu0 %v780_v21 }
  0x6c   :  { %719 = vmatprep.subr.bf16.mxu0 %v932_v0 }
  0x6f   :  { %720 = vmatpush3.bf16.msra.mxu0 %v781_v22 }
  0x70   :  { %721 = vmatprep.subr.bf16.mxu0 %v932_v0 }
  0x73   :  { %722 = vmatpush3.bf16.msra.mxu0 %v782_v23 }
  0x74   :  { %723 = vmatprep.subr.bf16.mxu0 %v932_v0 }
  0x77   :  { %724 = vmatpush3.bf16.msra.mxu0 %v783_v32 }
  0x78   :  { %725 = vmatprep.subr.bf16.mxu0 %v932_v0 }
  0x7b   :  { %726 = vmatpush3.bf16.msra.mxu0 %v784_v33 }
 0x11e   :  { %v213_v25 = vpop.f32.mrf.mxu0 }
 0x11f   :  { %v214_v26 = vadd.f32 %v597_v24, %v213_v25 }
 0x120   :  { %v689_v27 = vpop.f32.mrf.mxu0 }
 0x121   :  { %v219_v28 = vmax.f32 %v214_v26, 0.0 }
 0x122   :  { %v216_v29 = vpop.f32.mrf.mxu0 }
 0x123   :  { %v220_v30 = vpack.c.bf16 %v219_v28, %v219_v28 }
 0x124   :  { %v690_v31 = vpop.f32.mrf.mxu0 }
 0x125   :  { %708 = vmatmul.mubr.bf16.vlgmr.msra.gmra.mxu1 %v220_v30 }
 0x126   :  { %747 = vmatprep.mubr.msk.bf16.mxu1 %vm933_vm0, %v932_v0  ;;  %732 = vmatpush3.bf16.msra.mxu1 %v785_v34 }
 0x127   :  { %733 = vmatprep.subr.bf16.mxu1 %v932_v0 }
 0x12a   :  { %734 = vmatpush3.bf16.msra.mxu1 %v786_v35 }
 0x12b   :  { %735 = vmatprep.subr.bf16.mxu1 %v932_v0 }
 0x12e   :  { %736 = vmatpush3.bf16.msra.mxu1 %v787_v36 }
 0x12f   :  { %737 = vmatprep.subr.bf16.mxu1 %v932_v0 }
 0x132   :  { %738 = vmatpush3.bf16.msra.mxu1 %v788_v37 }
 0x133   :  { %739 = vmatprep.subr.bf16.mxu1 %v932_v0 }
 0x136   :  { %740 = vmatpush3.bf16.msra.mxu1 %v789_v38 }
 0x137   :  { %741 = vmatprep.subr.bf16.mxu1 %v932_v0 }
 0x13a   :  { %742 = vmatpush3.bf16.msra.mxu1 %v790_v39 }
 0x13b   :  { %743 = vmatprep.subr.bf16.mxu1 %v932_v0 }
 0x13e   :  { %744 = vmatpush3.bf16.msra.mxu1 %v791_v48 }
 0x13f   :  { %745 = vmatprep.subr.bf16.mxu1 %v932_v0 }
 0x142   :  { %746 = vmatpush3.bf16.msra.mxu1 %v792_v49 }
 0x1e5   :  { %v326_v41 = vpop.f32.mrf.mxu1 }
 0x1e6   :  { %v327_v42 = vadd.f32 %v606_v40, %v326_v41 }
 0x1e7   :  { %v709_v43 = vpop.f32.mrf.mxu1 }
 0x1e8   :  { %v332_v44 = vmax.f32 %v327_v42, 0.0 }
 0x1e9   :  { %v329_v45 = vpop.f32.mrf.mxu1 }
 0x1ea   :  { %v333_v46 = vpack.c.bf16 %v332_v44, %v332_v44 }
 0x1eb   :  { %v710_v47 = vpop.f32.mrf.mxu1 }
 0x1ec   :  { %728 = vmatmul.mubr.bf16.vlgmr.msra.gmra.mxu0 %v333_v46 }
 0x2ac   :  { %v439_v51 = vpop.f32.mrf.mxu0 }
 0x2ad   :  { %v440_v52 = vadd.f32 %v615_v50, %v439_v51 }
 0x2ae   :  { %v729_v53 = vpop.f32.mrf.mxu0 }
 0x2af   :  { %v445_v54 = vmax.f32 %v440_v52, 0.0 }
 0x2b0   :  { %v442_v55 = vpop.f32.mrf.mxu0 }
 0x2b1   :  { %v446_v56 = vpack.c.bf16 %v445_v54, %v445_v54 }
 0x2b2   :  { %v730_v57 = vpop.f32.mrf.mxu0 }
 0x2b3   :  { %748 = vmatmul.mubr.bf16.vlgmr.msra.gmra.mxu1 %v446_v56 }
 0x373   :  { %v552_v59 = vpop.f32.mrf.mxu1 }
 0x374   :  { %v553_v60 = vadd.f32 %v624_v58, %v552_v59 }
 0x375   :  { %v749_v61 = vpop.f32.mrf.mxu1 }
 0x376   :  { %v558_v63 = vmax.f32 %v553_v60, 0.0 }
 0x377   :  { %v555_v0 = vpop.f32.mrf.mxu1 }
 0x378   :  { %v566_v1 = vmul.f32 %v633_v62, %v558_v63 }
 0x379   :  { %v750_v2 = vpop.f32.mrf.mxu1 }
 0x37a   :  { %567 = vadd.xlane.f32.xlu0 %v566_v1 }
 0x403   :  { %v568_v4 = vpop.xlane.xlu0 %567 }
 0x404   :  { %v571_v5 = vadd.f32 %v570_v3, %v568_v4 }
 0x406   :  { %v634_v6 = vmul.f32 -1.442695, %v571_v5 }
 0x408   :  { %793 = vpow2.f32 %v634_v6 }
 0x415   :  { %v794_v7 = vpop.eup %793 }
 0x416   :  { %v575_v8 = vadd.f32 1.0, %v794_v7 }
 0x418   :  { %795 = vrcp.f32 %v575_v8 }
 0x425   :  { %v796_v9 = vpop.eup %795 }
 0x426   :  { %v578_v10 = vpack.c.bf16 %v796_v9, %v796_v9 }
 0x428   :  { %579 = vst [vmem:[#allocation12] sm:$0xf] %v578_v10 }
 0x429   :  { %908 = shalt.err (!%p905_p1)
}
 0x42a   :  { %589 = dma.vmem_to_hbm [thread:$0]  %s587_s29, 64, %s1094_s11, [#allocation5]  }
 0x42b   :  { %923 = dma.done.wait [#allocation5], 64  }
 0x42c   :  { %924 = vsyncadd [#allocation5], 4294967232 }
 0x42d   :  { %593 = vsyncpa [#allocation4], 1 }
 0x42e   :  { %594 = vsyncpa [#allocation7], 1 }
 0x42f   :  { %595 = vsyncpa [#allocation10], 1 }
 0x430   :  { %596 = vsyncpa [#allocation5], 1 }

// kernel: tpu_custom_call.1
= control target key start
LH: loop header
LB: loop body
LE: loop exit
PB: predicated region body
PF: predicated region fallthrough
CT: control target
= control target key end

     0   :  { %17 = vsyncpa [#allocation4], 0  ;;  %s1083_s0 = inlined_call_operand.hbm [shape: bf16[8,128], index: 0, kind: input, shape index: {}]   ;;  %s1084_s1 = inlined_call_operand.hbm [shape: bf16[128,128], index: 1, kind: input, shape index: {}]   ;;  %s1085_s2 = inlined_call_operand.vmem [shape: f32[1,128], index: 2, kind: input, shape index: {}]   ;;  %s1086_s3 = inlined_call_operand.hbm [shape: bf16[128,128], index: 3, kind: input, shape index: {}]   ;;  %s1087_s4 = inlined_call_operand.vmem [shape: f32[1,128], index: 4, kind: input, shape index: {}]   ;;  %s1088_s5 = inlined_call_operand.hbm [shape: bf16[128,128], index: 5, kind: input, shape index: {}]   ;;  %s1089_s6 = inlined_call_operand.vmem [shape: f32[1,128], index: 6, kind: input, shape index: {}]   ;;  %s1090_s7 = inlined_call_operand.hbm [shape: bf16[128,128], index: 7, kind: input, shape index: {}]   ;;  %s1091_s8 = inlined_call_operand.vmem [shape: f32[1,128], index: 8, kind: input, shape index: {}]   ;;  %s1092_s9 = inlined_call_operand.vmem [shape: f32[1,128], index: 9, kind: input, shape index: {}]   ;;  %s1093_s10 = inlined_call_operand.<no memory space> [shape: f32[1,1], index: 10, kind: input, shape index: {}]   ;;  %s1094_s11 = inlined_call_operand.hbm [shape: bf16[8,128], index: 11, kind: output, shape index: {}]  }
   0x1   :  { %18 = vsyncpa [#allocation7], 0 }
   0x2   :  { %19 = vsyncpa [#allocation10], 0 }
   0x3   :  { %20 = vsyncpa [#allocation5], 0  ;;  %s925_s17 = smov [#allocation6]  }
   0x4   :  { %s36_s18 = sshll.u32 %s925_s17, 4  ;;  %s37_s18 = int_to_ptr.vmem [resolvable:$true] %s36_s18 }
   0x5   :  { %s805_s19 = scalar_lea.vmem %s37_s18, 1024  ;;  %p810_p1 = scmp.lt.s32.totalorder %s37_s18, %s37_s18 }
   0x6   :  { %p806_p0 = scmp.ne.s32.totalorder %s37_s18, %s805_s19  ;;  %p811_p2 = scmp.lt.s32.totalorder %s805_s19, %s805_s19 }
   0x8   :  { %p812_p3 = por %p811_p2, %p810_p1 }
   0xa   :  { %p813_p4 = pnand %p812_p3, %p806_p0 }
   0xc   :  { %816 = shalt.err (!%p813_p4)
}
   0xd   :  { %s926_s20 = smov 64   ;;  %s927_s21 = smov 4  }
   0xe   :  { %42 = dma.hbm_to_vmem [thread:$0]  %s1084_s1, 1024, %s37_s18, [#allocation7], %s926_s20, %s926_s20, %s927_s21  }
   0xf   :  { %s928_s24 = smov [#allocation9]   ;;  %s929_s26 = smov [#allocation3]  }
  0x10   :  { %s64_s25 = sshll.u32 %s928_s24, 4  ;;  %s27_s27 = sshll.u32 %s929_s26, 4  ;;  %s65_s25 = int_to_ptr.vmem [resolvable:$true] %s64_s25  ;;  %s28_s27 = int_to_ptr.vmem [resolvable:$true] %s27_s27 }
  0x11   :  { %s825_s28 = scalar_lea.vmem %s65_s25, 1024  ;;  %p830_p6 = scmp.lt.s32.totalorder %s65_s25, %s65_s25 }
  0x12   :  { %p826_p5 = scmp.ne.s32.totalorder %s65_s25, %s825_s28  ;;  %p831_p7 = scmp.lt.s32.totalorder %s825_s28, %s825_s28 }
  0x14   :  { %p832_p8 = por %p831_p7, %p830_p6 }
  0x16   :  { %p833_p9 = pnand %p832_p8, %p826_p5 }
  0x18   :  { %836 = shalt.err (!%p833_p9)
}
  0x19   :  { %70 = dma.hbm_to_vmem [thread:$0]  %s1088_s5, 1024, %s65_s25, [#allocation10], %s926_s20, %s926_s20, %s927_s21  }
  0x1a   :  { %s845_s1 = scalar_lea.vmem %s28_s27, 64  ;;  %p850_p11 = scmp.lt.s32.totalorder %s28_s27, %s28_s27 }
  0x1b   :  { %p846_p10 = scmp.ne.s32.totalorder %s28_s27, %s845_s1  ;;  %p851_p12 = scmp.lt.s32.totalorder %s845_s1, %s845_s1 }
  0x1d   :  { %p852_p13 = por %p851_p12, %p850_p11 }
  0x1f   :  { %p853_p0 = pnand %p852_p13, %p846_p10 }
  0x21   :  { %856 = shalt.err (!%p853_p0)
}
  0x22   :  { %30 = dma.hbm_to_vmem [thread:$0]  %s1083_s0, 64, %s28_s27, [#allocation4]  }
  0x23   :  { %s930_s14 = smov [#allocation8]   ;;  %s931_s16 = smov [#allocation11]  }
  0x24   :  { %s50_s15 = sshll.u32 %s930_s14, 4  ;;  %s78_s17 = sshll.u32 %s931_s16, 4  ;;  %s51_s15 = int_to_ptr.vmem [resolvable:$true] %s50_s15  ;;  %s79_s17 = int_to_ptr.vmem [resolvable:$true] %s78_s17 }
  0x25   :  { %s865_s18 = scalar_lea.vmem %s51_s15, 1024  ;;  %p870_p2 = scmp.lt.s32.totalorder %s51_s15, %s51_s15 }
  0x26   :  { %p866_p1 = scmp.ne.s32.totalorder %s51_s15, %s865_s18  ;;  %p871_p3 = scmp.lt.s32.totalorder %s865_s18, %s865_s18 }
  0x28   :  { %p872_p4 = por %p871_p3, %p870_p2 }
  0x2a   :  { %p873_p5 = pnand %p872_p4, %p866_p1 }
  0x2c   :  { %876 = shalt.err (!%p873_p5)
}
  0x2d   :  { %56 = dma.hbm_to_vmem [thread:$0]  %s1086_s3, 1024, %s51_s15, [#allocation7], %s926_s20, %s926_s20, %s927_s21  }
  0x2e   :  { %s885_s0 = scalar_lea.vmem %s79_s17, 1024  ;;  %p890_p7 = scmp.lt.s32.totalorder %s79_s17, %s79_s17 }
  0x2f   :  { %p886_p6 = scmp.ne.s32.totalorder %s79_s17, %s885_s0  ;;  %p891_p8 = scmp.lt.s32.totalorder %s885_s0, %s885_s0 }
  0x31   :  { %p892_p9 = por %p891_p8, %p890_p7 }
  0x33   :  { %p893_p10 = pnand %p892_p9, %p886_p6 }
  0x35   :  { %896 = shalt.err (!%p893_p10)
}
  0x36   :  { %84 = dma.hbm_to_vmem [thread:$0]  %s1090_s7, 1024, %s79_s17, [#allocation10], %s926_s20, %s926_s20, %s927_s21  }
  0x37   :  { %917 = dma.done.wait [#allocation4], 64  }
  0x38   :  { %918 = vsyncadd [#allocation4], 4294967232 }
  0x39   :  { %919 = dma.done.wait [#allocation7], 2048  }
  0x3a   :  { %920 = vsyncadd [#allocation7], 4294965248 }
  0x3b   :  { %921 = dma.done.wait [#allocation10], 2048  }
  0x3c   :  { %922 = vsyncadd [#allocation10], 4294965248  ;;  %v932_v0 = vmov 0.0   ;;  %vm933_vm0 = vmmov 0   ;;  %v761_v1 = vld [vmem:[#allocation6 + $0x38] sm:$0xff]   ;;  %v762_v2 = vld [vmem:[#allocation6 + $0x30] sm:$0xff]  }
  0x3d   :  { %671 = vmatprep.subr.bf16.mxu0 %v932_v0  ;;  %687 = vmatprep.mubr.msk.bf16.mxu0 %vm933_vm0, %v932_v0  ;;  %v763_v3 = vld [vmem:[#allocation6 + $0x28] sm:$0xff]   ;;  %v769_v4 = vld [vmem:[#allocation8 + $0x38] sm:$0xff]   ;;  %v764_v5 = vld [vmem:[#allocation6 + $0x20] sm:$0xff]  }
  0x3e   :  { %691 = vmatprep.subr.bf16.mxu1 %v932_v0  ;;  %707 = vmatprep.mubr.msk.bf16.mxu1 %vm933_vm0, %v932_v0  ;;  %v770_v6 = vld [vmem:[#allocation8 + $0x30] sm:$0xff]   ;;  %v765_v7 = vld [vmem:[#allocation6 + $0x18] sm:$0xff]   ;;  %v771_v8 = vld [vmem:[#allocation8 + $0x28] sm:$0xff]  }
  0x3f   :  { %672 = vmatpush3.bf16.msra.mxu0 %v761_v1  ;;  %692 = vmatpush3.bf16.msra.mxu1 %v769_v4  ;;  %v766_v9 = vld [vmem:[#allocation6 + $0x10] sm:$0xff]   ;;  %v772_v10 = vld [vmem:[#allocation8 + $0x20] sm:$0xff]   ;;  %v767_v11 = vld [vmem:[#allocation6 + $0x8] sm:$0xff]  }
  0x40   :  { %673 = vmatprep.subr.bf16.mxu0 %v932_v0  ;;  %693 = vmatprep.subr.bf16.mxu1 %v932_v0  ;;  %v773_v12 = vld [vmem:[#allocation8 + $0x18] sm:$0xff]   ;;  %v768_v13 = vld [vmem:[#allocation6] sm:$0xff]   ;;  %v774_v14 = vld [vmem:[#allocation8 + $0x10] sm:$0xff]  }
  0x41   :  { %v107_v15 = vld [vmem:[#allocation3] sm:$0xf]  ;;  %v775_v16 = vld [vmem:[#allocation8 + $0x8] sm:$0xff]   ;;  %v776_v17 = vld [vmem:[#allocation8] sm:$0xff]  }
  0x42   :  { %v777_v18 = vld [vmem:[#allocation9 + $0x38] sm:$0xff]   ;;  %v778_v19 = vld [vmem:[#allocation9 + $0x30] sm:$0xff]   ;;  %v779_v20 = vld [vmem:[#allocation9 + $0x28] sm:$0xff]  }
  0x43   :  { %674 = vmatpush3.bf16.msra.mxu0 %v762_v2  ;;  %694 = vmatpush3.bf16.msra.mxu1 %v770_v6  ;;  %v780_v21 = vld [vmem:[#allocation9 + $0x20] sm:$0xff]   ;;  %v781_v22 = vld [vmem:[#allocation9 + $0x18] sm:$0xff]   ;;  %v782_v23 = vld [vmem:[#allocation9 + $0x10] sm:$0xff]  }
  0x44   :  { %675 = vmatprep.subr.bf16.mxu0 %v932_v0  ;;  %695 = vmatprep.subr.bf16.mxu1 %v932_v0  ;;  %v597_v24 = vld [vmem:[%s1085_s2] ss:$0 sm:$0xff]  ;;  %v783_v32 = vld [vmem:[#allocation9 + $0x8] sm:$0xff]   ;;  %v784_v33 = vld [vmem:[#allocation9] sm:$0xff]  }
  0x45   :  { %v785_v34 = vld [vmem:[#allocation11 + $0x38] sm:$0xff]   ;;  %v786_v35 = vld [vmem:[#allocation11 + $0x30] sm:$0xff]   ;;  %v787_v36 = vld [vmem:[#allocation11 + $0x28] sm:$0xff]  }
  0x46   :  { %v788_v37 = vld [vmem:[#allocation11 + $0x20] sm:$0xff]   ;;  %v789_v38 = vld [vmem:[#allocation11 + $0x18] sm:$0xff]   ;;  %v790_v39 = vld [vmem:[#allocation11 + $0x10] sm:$0xff]  }
  0x47   :  { %676 = vmatpush3.bf16.msra.mxu0 %v763_v3  ;;  %696 = vmatpush3.bf16.msra.mxu1 %v771_v8  ;;  %v606_v40 = vld [vmem:[%s1087_s4] ss:$0 sm:$0xff]  ;;  %v791_v48 = vld [vmem:[#allocation11 + $0x8] sm:$0xff]   ;;  %v792_v49 = vld [vmem:[#allocation11] sm:$0xff]   ;;  %v570_v3 = vstv %s1093_s10 }
  0x48   :  { %677 = vmatprep.subr.bf16.mxu0 %v932_v0  ;;  %697 = vmatprep.subr.bf16.mxu1 %v932_v0  ;;  %v615_v50 = vld [vmem:[%s1089_s6] ss:$0 sm:$0xff] }
  0x49   :  { %v624_v58 = vld [vmem:[%s1091_s8] ss:$0 sm:$0xff]  ;;  %s934_s8 = smov [#allocation12]  }
  0x4a   :  { %v633_v62 = vld [vmem:[%s1092_s9] ss:$0 sm:$0xff]  ;;  %s586_s29 = sshll.u32 %s934_s8, 4  ;;  %s587_s29 = int_to_ptr.vmem [resolvable:$true] %s586_s29 }
  0x4b   :  { %678 = vmatpush3.bf16.msra.mxu0 %v764_v5  ;;  %698 = vmatpush3.bf16.msra.mxu1 %v772_v10  ;;  %s897_s9 = scalar_lea.vmem %s587_s29, 64  ;;  %p902_p12 = scmp.lt.s32.totalorder %s587_s29, %s587_s29 }
  0x4c   :  { %679 = vmatprep.subr.bf16.mxu0 %v932_v0  ;;  %699 = vmatprep.subr.bf16.mxu1 %v932_v0  ;;  %p898_p11 = scmp.ne.s32.totalorder %s587_s29, %s897_s9  ;;  %p903_p13 = scmp.lt.s32.totalorder %s897_s9, %s897_s9 }
  0x4e   :  { %p904_p0 = por %p903_p13, %p902_p12 }
  0x4f   :  { %680 = vmatpush3.bf16.msra.mxu0 %v765_v7  ;;  %700 = vmatpush3.bf16.msra.mxu1 %v773_v12 }
  0x50   :  { %681 = vmatprep.subr.bf16.mxu0 %v932_v0  ;;  %701 = vmatprep.subr.bf16.mxu1 %v932_v0  ;;  %p905_p1 = pnand %p904_p0, %p898_p11 }
  0x53   :  { %682 = vmatpush3.bf16.msra.mxu0 %v766_v9  ;;  %702 = vmatpush3.bf16.msra.mxu1 %v774_v14 }
  0x54   :  { %683 = vmatprep.subr.bf16.mxu0 %v932_v0  ;;  %703 = vmatprep.subr.bf16.mxu1 %v932_v0 }
  0x57   :  { %684 = vmatpush3.bf16.msra.mxu0 %v767_v11  ;;  %704 = vmatpush3.bf16.msra.mxu1 %v775_v16 }
  0x58   :  { %685 = vmatprep.subr.bf16.mxu0 %v932_v0  ;;  %705 = vmatprep.subr.bf16.mxu1 %v932_v0 }
  0x5b   :  { %686 = vmatpush3.bf16.msra.mxu0 %v768_v13  ;;  %706 = vmatpush3.bf16.msra.mxu1 %v776_v17 }
  0x5c   :  { %711 = vmatprep.subr.bf16.mxu0 %v932_v0  ;;  %731 = vmatprep.subr.bf16.mxu1 %v932_v0 }
  0x5e   :  { %688 = vmatmul.mubr.bf16.vlgmr.msra.gmra.mxu0 %v107_v15 }
  0x5f   :  { %727 = vmatprep.mubr.msk.bf16.mxu0 %vm933_vm0, %v932_v0  ;;  %712 = vmatpush3.bf16.msra.mxu0 %v777_v18 }
  0x60   :  { %713 = vmatprep.subr.bf16.mxu0 %v932_v0 }
  0x63   :  { %714 = vmatpush3.bf16.msra.mxu0 %v778_v19 }
  0x64   :  { %715 = vmatprep.subr.bf16.mxu0 %v932_v0 }
  0x67   :  { %716 = vmatpush3.bf16.msra.mxu0 %v779_v20 }
  0x68   :  { %717 = vmatprep.subr.bf16.mxu0 %v932_v0 }
  0x6b   :  { %718 = vmatpush3.bf16.msra.mxu0 %v780_v21 }
  0x6c   :  { %719 = vmatprep.subr.bf16.mxu0 %v932_v0 }
  0x6f   :  { %720 = vmatpush3.bf16.msra.mxu0 %v781_v22 }
  0x70   :  { %721 = vmatprep.subr.bf16.mxu0 %v932_v0 }
  0x73   :  { %722 = vmatpush3.bf16.msra.mxu0 %v782_v23 }
  0x74   :  { %723 = vmatprep.subr.bf16.mxu0 %v932_v0 }
  0x77   :  { %724 = vmatpush3.bf16.msra.mxu0 %v783_v32 }
  0x78   :  { %725 = vmatprep.subr.bf16.mxu0 %v932_v0 }
  0x7b   :  { %726 = vmatpush3.bf16.msra.mxu0 %v784_v33 }
 0x11e   :  { %v213_v25 = vpop.f32.mrf.mxu0 }
 0x11f   :  { %v214_v26 = vadd.f32 %v597_v24, %v213_v25 }
 0x120   :  { %v689_v27 = vpop.f32.mrf.mxu0 }
 0x121   :  { %v219_v28 = vmax.f32 %v214_v26, 0.0 }
 0x122   :  { %v216_v29 = vpop.f32.mrf.mxu0 }
 0x123   :  { %v220_v30 = vpack.c.bf16 %v219_v28, %v219_v28 }
 0x124   :  { %v690_v31 = vpop.f32.mrf.mxu0 }
 0x125   :  { %708 = vmatmul.mubr.bf16.vlgmr.msra.gmra.mxu1 %v220_v30 }
 0x126   :  { %747 = vmatprep.mubr.msk.bf16.mxu1 %vm933_vm0, %v932_v0  ;;  %732 = vmatpush3.bf16.msra.mxu1 %v785_v34 }
 0x127   :  { %733 = vmatprep.subr.bf16.mxu1 %v932_v0 }
 0x12a   :  { %734 = vmatpush3.bf16.msra.mxu1 %v786_v35 }
 0x12b   :  { %735 = vmatprep.subr.bf16.mxu1 %v932_v0 }
 0x12e   :  { %736 = vmatpush3.bf16.msra.mxu1 %v787_v36 }
 0x12f   :  { %737 = vmatprep.subr.bf16.mxu1 %v932_v0 }
 0x132   :  { %738 = vmatpush3.bf16.msra.mxu1 %v788_v37 }
 0x133   :  { %739 = vmatprep.subr.bf16.mxu1 %v932_v0 }
 0x136   :  { %740 = vmatpush3.bf16.msra.mxu1 %v789_v38 }
 0x137   :  { %741 = vmatprep.subr.bf16.mxu1 %v932_v0 }
 0x13a   :  { %742 = vmatpush3.bf16.msra.mxu1 %v790_v39 }
 0x13b   :  { %743 = vmatprep.subr.bf16.mxu1 %v932_v0 }
 0x13e   :  { %744 = vmatpush3.bf16.msra.mxu1 %v791_v48 }
 0x13f   :  { %745 = vmatprep.subr.bf16.mxu1 %v932_v0 }
 0x142   :  { %746 = vmatpush3.bf16.msra.mxu1 %v792_v49 }
 0x1e5   :  { %v326_v41 = vpop.f32.mrf.mxu1 }
 0x1e6   :  { %v327_v42 = vadd.f32 %v606_v40, %v326_v41 }
 0x1e7   :  { %v709_v43 = vpop.f32.mrf.mxu1 }
 0x1e8   :  { %v332_v44 = vmax.f32 %v327_v42, 0.0 }
 0x1e9   :  { %v329_v45 = vpop.f32.mrf.mxu1 }
 0x1ea   :  { %v333_v46 = vpack.c.bf16 %v332_v44, %v332_v44 }
 0x1eb   :  { %v710_v47 = vpop.f32.mrf.mxu1 }
 0x1ec   :  { %728 = vmatmul.mubr.bf16.vlgmr.msra.gmra.mxu0 %v333_v46 }
 0x2ac   :  { %v439_v51 = vpop.f32.mrf.mxu0 }
 0x2ad   :  { %v440_v52 = vadd.f32 %v615_v50, %v439_v51 }
 0x2ae   :  { %v729_v53 = vpop.f32.mrf.mxu0 }
 0x2af   :  { %v445_v54 = vmax.f32 %v440_v52, 0.0 }
 0x2b0   :  { %v442_v55 = vpop.f32.mrf.mxu0 }
 0x2b1   :  { %v446_v56 = vpack.c.bf16 %v445_v54, %v445_v54 }
 0x2b2   :  { %v730_v57 = vpop.f32.mrf.mxu0 }
 0x2b3   :  { %748 = vmatmul.mubr.bf16.vlgmr.msra.gmra.mxu1 %v446_v56 }
 0x373   :  { %v552_v59 = vpop.f32.mrf.mxu1 }
 0x374   :  { %v553_v60 = vadd.f32 %v624_v58, %v552_v59 }
 0x375   :  { %v749_v61 = vpop.f32.mrf.mxu1 }
 0x376   :  { %v558_v63 = vmax.f32 %v553_v60, 0.0 }
 0x377   :  { %v555_v0 = vpop.f32.mrf.mxu1 }
 0x378   :  { %v566_v1 = vmul.f32 %v633_v62, %v558_v63 }
 0x379   :  { %v750_v2 = vpop.f32.mrf.mxu1 }
 0x37a   :  { %567 = vadd.xlane.f32.xlu0 %v566_v1 }
 0x403   :  { %v568_v4 = vpop.xlane.xlu0 %567 }
 0x404   :  { %v571_v5 = vadd.f32 %v570_v3, %v568_v4 }
 0x406   :  { %v634_v6 = vmul.f32 -1.442695, %v571_v5 }
 0x408   :  { %793 = vpow2.f32 %v634_v6 }
 0x415   :  { %v794_v7 = vpop.eup %793 }
 0x416   :  { %v575_v8 = vadd.f32 1.0, %v794_v7 }
 0x418   :  { %795 = vrcp.f32 %v575_v8 }
 0x425   :  { %v796_v9 = vpop.eup %795 }
 0x426   :  { %v578_v10 = vpack.c.bf16 %v796_v9, %v796_v9 }
 0x428   :  { %579 = vst [vmem:[#allocation12] sm:$0xf] %v578_v10 }
 0x429   :  { %908 = shalt.err (!%p905_p1)
}
 0x42a   :  { %589 = dma.vmem_to_hbm [thread:$0]  %s587_s29, 64, %s1094_s11, [#allocation5]  }
 0x42b   :  { %923 = dma.done.wait [#allocation5], 64  }
 0x42c   :  { %924 = vsyncadd [#allocation5], 4294967232 }
 0x42d   :  { %593 = vsyncpa [#allocation4], 1 }
 0x42e   :  { %594 = vsyncpa [#allocation7], 1 }
 0x42f   :  { %595 = vsyncpa [#allocation10], 1 }
 0x430   :  { %596 = vsyncpa [#allocation5], 1 }

</bundles_post_ra>
